<compile_context>
chip_gen: v6e
topology: v6e:2x2x1
jax: 0.10.0
libtpu: 0.0.40
codegen_flags: <defaults>
</compile_context>

<pallas_src>
import functools

import jax
import jax.numpy as jnp
from jax.experimental import pallas as pl
from jax.experimental.pallas import tpu as pltpu


def _round_up(x, m):
    return ((x + m - 1) // m) * m


def _gcn_kernel_fused(a_ref, x_ref, wt_ref, b_ref, o_ref, acc_ref):
    """acc += A_tile @ X_tile ; at last k:  out = acc @ W.T + b."""
    k = pl.program_id(1)

    @pl.when(k == 0)
    def _():
        acc_ref[...] = jnp.zeros_like(acc_ref)

    acc_ref[...] += jnp.dot(a_ref[...], x_ref[...],
                            preferred_element_type=jnp.float32)

    @pl.when(k == pl.num_programs(1) - 1)
    def _():
        out = jnp.dot(acc_ref[...], wt_ref[...],
                      preferred_element_type=jnp.float32)
        o_ref[...] = (out + b_ref[...]).astype(o_ref.dtype)


def _gcn_kernel_propagate(a_ref, xw_ref, b_ref, o_ref, acc_ref):
    """acc += A_tile @ (XW)_tile ; at last k:  out = acc + b."""
    k = pl.program_id(1)

    @pl.when(k == 0)
    def _():
        acc_ref[...] = jnp.zeros_like(acc_ref)

    acc_ref[...] += jnp.dot(a_ref[...], xw_ref[...],
                            preferred_element_type=jnp.float32)

    @pl.when(k == pl.num_programs(1) - 1)
    def _():
        o_ref[...] = (acc_ref[...] + b_ref[...]).astype(o_ref.dtype)


@functools.partial(jax.jit, static_argnames=("tm", "tk", "vmem_limit_bytes"))
def gcn_layer(A, X, W, b, *, tm=256, tk=512, vmem_limit_bytes=32 * 1024 * 1024):
    """out = (A @ X) @ W.T + b, streamed through a tiled Pallas kernel."""
    N = A.shape[0]
    C_out, C_in = W.shape
    out_dtype = X.dtype

    # --- choose matmul order by the smaller feature width ---------------------
    if C_out < C_in:
        # Precompute the tiny [N, C_out] projection; kernel only streams A.
        F = jnp.asarray(X, jnp.float32) @ jnp.asarray(W, jnp.float32).T
        d_mid = C_out
        fuse_projection = False
    else:
        F = X
        d_mid = C_in
        fuse_projection = True

    # --- lane-dense padding of feature axes ------------------------------------
    pd_mid = _round_up(d_mid, 128)
    pC_out = _round_up(C_out, 128)

    # --- tile sizes (clamped for small N); TK lane-aligned, TM sublane-aligned --
    tm_e = max(8, min(tm, _round_up(N, 8)))
    tk_e = max(128, min(tk, _round_up(N, 128)))
    pN_r = _round_up(N, tm_e)   # padded rows of A / out
    pN_k = _round_up(N, tk_e)   # padded contraction dim (cols of A / rows of F)

    # --- pad + cast operands (bf16 for the bandwidth-bound streams) ------------
    A_p = jnp.pad(A.astype(jnp.bfloat16), ((0, pN_r - N), (0, pN_k - N)))
    F_p = jnp.pad(F.astype(jnp.bfloat16), ((0, pN_k - N), (0, pd_mid - d_mid)))
    b_p = jnp.pad(b.astype(jnp.float32), (0, pC_out - C_out)).reshape(1, pC_out)

    grid = (pN_r // tm_e, pN_k // tk_e)

    # NOTE: if profiling shows exposed A DMA, add pipeline_mode=pl.Buffered(3)
    # to the A BlockSpec or enlarge tk.
    a_spec = pl.BlockSpec((tm_e, tk_e), lambda i, k: (i, k))
    f_spec = pl.BlockSpec((tk_e, pd_mid), lambda i, k: (k, 0))
    b_spec = pl.BlockSpec((1, pC_out), lambda i, k: (0, 0))
    o_spec = pl.BlockSpec((tm_e, pC_out), lambda i, k: (i, 0))

    if fuse_projection:
        Wt_p = jnp.pad(W.T.astype(jnp.float32),
                       ((0, pd_mid - C_in), (0, pC_out - C_out)))
        kernel = _gcn_kernel_fused
        in_specs = [a_spec, f_spec,
                    pl.BlockSpec((pd_mid, pC_out), lambda i, k: (0, 0)),  # W.T
                    b_spec]
        operands = (A_p, F_p, Wt_p, b_p)
    else:
        kernel = _gcn_kernel_propagate
        in_specs = [a_spec, f_spec, b_spec]
        operands = (A_p, F_p, b_p)

    out_p = pl.pallas_call(
        kernel,
        out_shape=jax.ShapeDtypeStruct((pN_r, pC_out), out_dtype),
        grid_spec=pltpu.PrefetchScalarGridSpec(
            num_scalar_prefetch=0,
            grid=grid,
            in_specs=in_specs,
            out_specs=o_spec,
            scratch_shapes=[pltpu.VMEM((tm_e, pd_mid), jnp.float32)],
        ),
        compiler_params=pltpu.CompilerParams(
            dimension_semantics=("parallel", "arbitrary"),
            vmem_limit_bytes=vmem_limit_bytes,
        ),
    )(*operands)

    return out_p[:N, :C_out]


def _reference(A, X, W, b):
    # Reference on the same bf16-quantized streamed inputs (f32 accumulation),
    # so the comparison isolates kernel correctness from bf16 quantization.
    A_q = A.astype(jnp.bfloat16).astype(jnp.float32)
    X_q = X.astype(jnp.bfloat16).astype(jnp.float32)
    return (A_q @ X_q) @ W.T + b


if __name__ == "__main__":
    key = jax.random.PRNGKey(0)

    # Case 1: C_in < C_out -> fused (A@X)@W.T path.  (demo-scale; at these sizes
    # plain XLA would also be fine — the kernel pays off at large N.)
    N1, Cin1, Cout1 = 64, 16, 32
    k_a, k_x, k_w, k_b, key = jax.random.split(key, 5)
    A1 = jax.random.normal(k_a, (N1, N1), dtype=jnp.float32)
    X1 = jax.random.normal(k_x, (N1, Cin1), dtype=jnp.float32)
    bound1 = 1.0 / (Cin1 ** 0.5)
    W1 = jax.random.uniform(k_w, (Cout1, Cin1), minval=-bound1, maxval=bound1,
                            dtype=jnp.float32)
    b1 = jax.random.uniform(k_b, (Cout1,), minval=-bound1, maxval=bound1,
                            dtype=jnp.float32)

    out1 = gcn_layer(A1, X1, W1, b1)
    jax.block_until_ready(out1)
    ref1 = _reference(A1, X1, W1, b1)
    assert out1.shape == (N1, Cout1)
    assert jnp.allclose(out1, ref1, atol=2e-3, rtol=2e-3)

    # Case 2: C_out < C_in and ragged N -> precomputed X@W.T path + padding.
    N2, Cin2, Cout2 = 100, 40, 24
    k_a, k_x, k_w, k_b, key = jax.random.split(key, 5)
    A2 = jax.random.normal(k_a, (N2, N2), dtype=jnp.float32)
    X2 = jax.random.normal(k_x, (N2, Cin2), dtype=jnp.float32)
    bound2 = 1.0 / (Cin2 ** 0.5)
    W2 = jax.random.uniform(k_w, (Cout2, Cin2), minval=-bound2, maxval=bound2,
                            dtype=jnp.float32)
    b2 = jax.random.uniform(k_b, (Cout2,), minval=-bound2, maxval=bound2,
                            dtype=jnp.float32)

    out2 = gcn_layer(A2, X2, W2, b2)
    jax.block_until_ready(out2)
    A2_q = A2.astype(jnp.bfloat16).astype(jnp.float32)
    XW2_q = (X2 @ W2.T).astype(jnp.bfloat16).astype(jnp.float32)
    ref2 = A2_q @ XW2_q + b2
    assert out2.shape == (N2, Cout2)
    assert jnp.allclose(out2, ref2, atol=2e-3, rtol=2e-3)

    print("KERNEL_OK")
</pallas_src>

<mosaic_0001>
module attributes {stable_mosaic.version = 11 : i64} {
  func.func @_gcn_kernel_fused(%arg0: i32, %arg1: i32, %arg2: memref<64x128xbf16, #tpu.memory_space<vmem>>, %arg3: memref<128x128xbf16, #tpu.memory_space<vmem>>, %arg4: memref<128x128xf32, #tpu.memory_space<vmem>>, %arg5: memref<1x128xf32, #tpu.memory_space<vmem>>, %arg6: memref<64x128xf32, #tpu.memory_space<vmem>>, %arg7: memref<64x128xf32, #tpu.memory_space<vmem>>) attributes {dimension_semantics = [#tpu.dimension_semantics<parallel>, #tpu.dimension_semantics<arbitrary>], iteration_bounds = array<i64: 1, 1>, scalar_prefetch = 0 : i64, scratch_operands = 1 : i64, tpu.core_type = #tpu.core_type<tc>, window_params = [{transform_indices = @transform_0, window_bounds = array<i64: 64, 128>}, {transform_indices = @transform_1, window_bounds = array<i64: 128, 128>}, {pipeline_mode = #tpu.pipeline_mode<synchronous>, transform_indices = @transform_2, window_bounds = array<i64: 128, 128>}, {pipeline_mode = #tpu.pipeline_mode<synchronous>, transform_indices = @transform_3, window_bounds = array<i64: 1, 128>}, {transform_indices = @transform_4, window_bounds = array<i64: 64, 128>}]} {
    %c0_i32 = arith.constant 0 : i32
    %0 = arith.cmpi eq, %arg1, %c0_i32 : i32
    %1 = arith.extui %0 : i1 to i32
    %c0_i32_0 = arith.constant 0 : i32
    %2 = arith.cmpi ne, %1, %c0_i32_0 : i32
    scf.if %2 {
      %cst_10 = arith.constant 0.000000e+00 : f32
      %12 = vector.broadcast %cst_10 : f32 to vector<64x128xf32>
      %c0_11 = arith.constant 0 : index
      %c0_12 = arith.constant 0 : index
      %13 = vector.load %arg7[%c0_11, %c0_12] : memref<64x128xf32, #tpu.memory_space<vmem>>, vector<64x128xf32>
      tpu.vector_store %arg7[%c0_11, %c0_12], %12 {strides = array<i32>} : memref<64x128xf32, #tpu.memory_space<vmem>>, vector<64x128xf32>,
    } else {
    }
    %c0 = arith.constant 0 : index
    %c0_1 = arith.constant 0 : index
    %3 = vector.load %arg7[%c0, %c0_1] : memref<64x128xf32, #tpu.memory_space<vmem>>, vector<64x128xf32>
    %c0_2 = arith.constant 0 : index
    %c0_3 = arith.constant 0 : index
    %4 = vector.load %arg2[%c0_2, %c0_3] : memref<64x128xbf16, #tpu.memory_space<vmem>>, vector<64x128xbf16>
    %c0_4 = arith.constant 0 : index
    %c0_5 = arith.constant 0 : index
    %5 = vector.load %arg3[%c0_4, %c0_5] : memref<128x128xbf16, #tpu.memory_space<vmem>>, vector<128x128xbf16>
    %cst = arith.constant dense<0.000000e+00> : vector<64x128xf32>
    %6 = tpu.matmul %4, %5, %cst {dimension_numbers = #tpu.dot_dimension_numbers<[1], [0], [0], [1], [0, 0, 1, 1], [], []>} : vector<64x128xbf16>, vector<128x128xbf16>, vector<64x128xf32> -> vector<64x128xf32>
    %7 = arith.addf %3, %6 : vector<64x128xf32>
    %c0_6 = arith.constant 0 : index
    %c0_7 = arith.constant 0 : index
    %8 = vector.load %arg7[%c0_6, %c0_7] : memref<64x128xf32, #tpu.memory_space<vmem>>, vector<64x128xf32>
    tpu.vector_store %arg7[%c0_6, %c0_7], %7 {strides = array<i32>} : memref<64x128xf32, #tpu.memory_space<vmem>>, vector<64x128xf32>,
    %c0_i32_8 = arith.constant 0 : i32
    %9 = arith.cmpi eq, %arg1, %c0_i32_8 : i32
    %10 = arith.extui %9 : i1 to i32
    %c0_i32_9 = arith.constant 0 : i32
    %11 = arith.cmpi ne, %10, %c0_i32_9 : i32
    scf.if %11 {
      %c0_10 = arith.constant 0 : index
      %c0_11 = arith.constant 0 : index
      %12 = vector.load %arg7[%c0_10, %c0_11] : memref<64x128xf32, #tpu.memory_space<vmem>>, vector<64x128xf32>
      %c0_12 = arith.constant 0 : index
      %c0_13 = arith.constant 0 : index
      %13 = vector.load %arg4[%c0_12, %c0_13] : memref<128x128xf32, #tpu.memory_space<vmem>>, vector<128x128xf32>
      %cst_14 = arith.constant dense<0.000000e+00> : vector<64x128xf32>
      %14 = tpu.matmul %12, %13, %cst_14 {dimension_numbers = #tpu.dot_dimension_numbers<[1], [0], [0], [1], [0, 0, 1, 1], [], []>} : vector<64x128xf32>, vector<128x128xf32>, vector<64x128xf32> -> vector<64x128xf32>
      %c0_15 = arith.constant 0 : index
      %c0_16 = arith.constant 0 : index
      %15 = vector.load %arg5[%c0_15, %c0_16] : memref<1x128xf32, #tpu.memory_space<vmem>>, vector<1x128xf32>
      %16 = vector.broadcast %15 : vector<1x128xf32> to vector<64x128xf32>
      %17 = arith.addf %14, %16 : vector<64x128xf32>
      %c0_17 = arith.constant 0 : index
      %c0_18 = arith.constant 0 : index
      %18 = vector.load %arg6[%c0_17, %c0_18] : memref<64x128xf32, #tpu.memory_space<vmem>>, vector<64x128xf32>
      tpu.vector_store %arg6[%c0_17, %c0_18], %17 {strides = array<i32>} : memref<64x128xf32, #tpu.memory_space<vmem>>, vector<64x128xf32>,
    } else {
    }
    return
  }
  func.func @transform_0(%arg0: i32, %arg1: i32) -> (i32, i32) {
    %c0_i32 = arith.constant 0 : i32
    return %arg0, %arg1 : i32, i32
  }
  func.func @transform_1(%arg0: i32, %arg1: i32) -> (i32, i32) {
    %c0_i32 = arith.constant 0 : i32
    %c0_i32_0 = arith.constant 0 : i32
    return %arg1, %c0_i32 : i32, i32
  }
  func.func @transform_2(%arg0: i32, %arg1: i32) -> (i32, i32) {
    %c0_i32 = arith.constant 0 : i32
    %c0_i32_0 = arith.constant 0 : i32
    %c0_i32_1 = arith.constant 0 : i32
    return %c0_i32, %c0_i32_0 : i32, i32
  }
  func.func @transform_3(%arg0: i32, %arg1: i32) -> (i32, i32) {
    %c0_i32 = arith.constant 0 : i32
    %c0_i32_0 = arith.constant 0 : i32
    %c0_i32_1 = arith.constant 0 : i32
    return %c0_i32, %c0_i32_0 : i32, i32
  }
  func.func @transform_4(%arg0: i32, %arg1: i32) -> (i32, i32) {
    %c0_i32 = arith.constant 0 : i32
    %c0_i32_0 = arith.constant 0 : i32
    return %arg0, %c0_i32 : i32, i32
  }
}

</mosaic_0001>

<bundles_post_ra>
// kernel: gcn_layer.1
= control target key start
LH: loop header
LB: loop body
LE: loop exit
PB: predicated region body
PF: predicated region fallthrough
CT: control target
= control target key end

     0   :  { %s631_s1 = inlined_call_operand.vmem [shape: bf16[128,128], index: 1, kind: input, shape index: {}]   ;;  %s632_s0 = inlined_call_operand.vmem [shape: bf16[64,128], index: 0, kind: input, shape index: {}]   ;;  %s633_s2 = inlined_call_operand.vmem [shape: f32[128,128], index: 2, kind: input, shape index: {}]   ;;  %s634_s3 = inlined_call_operand.vmem [shape: f32[1,128], index: 3, kind: input, shape index: {}]   ;;  %s635_s4 = inlined_call_operand.vmem [shape: f32[64,128], index: 4, kind: output, shape index: {}]  }
   0x1   :  { %v483_v0 = vld [vmem:[%s631_s1 + $0x38] sm:$0xff]   ;;  %v484_v1 = vld [vmem:[%s631_s1 + $0x30] sm:$0xff]   ;;  %v485_v2 = vld [vmem:[%s631_s1 + $0x28] sm:$0xff]  }
   0x2   :  { %415 = vmatprep.subr.bf16.mxu0 %v483_v0  ;;  %v486_v3 = vld [vmem:[%s631_s1 + $0x20] sm:$0xff]   ;;  %v487_v5 = vld [vmem:[%s631_s1 + $0x18] sm:$0xff]   ;;  %v240_v7 = vld [vmem:[%s633_s2 + $0x70] sm:$0xff] }
   0x3   :  { %416 = vmatpush3.bf16.msra.mxu0 %v483_v0  ;;  %v491_v4 = vld [vmem:[%s632_s0] sm:$0xff]   ;;  %v241_v6 = vld [vmem:[%s633_s2 + $0x78] sm:$0xff]  ;;  %v239_v8 = vld [vmem:[%s633_s2 + $0x68] sm:$0xff] }
   0x4   :  { %417 = vmatprep.subr.bf16.mxu0 %v484_v1  ;;  %431 = vmatprep.mubr.bf16.mxu0 %v491_v4  ;;  %v488_v9 = vld [vmem:[%s631_s1 + $0x10] sm:$0xff]   ;;  %v238_v10 = vld [vmem:[%s633_s2 + $0x60] sm:$0xff]  ;;  %v237_v11 = vld [vmem:[%s633_s2 + $0x58] sm:$0xff] }
   0x5   :  { %439 = vmatprep.subr.mxu1 %v241_v6  ;;  %v489_v12 = vld [vmem:[%s631_s1 + $0x8] sm:$0xff]   ;;  %v236_v13 = vld [vmem:[%s633_s2 + $0x50] sm:$0xff]  ;;  %v490_v15 = vld [vmem:[%s631_s1] sm:$0xff]  }
   0x6   :  { %440 = vmatpush3.msra.mxu1 %v241_v6  ;;  %v235_v14 = vld [vmem:[%s633_s2 + $0x48] sm:$0xff]  ;;  %v234_v16 = vld [vmem:[%s633_s2 + $0x40] sm:$0xff]  ;;  %v233_v17 = vld [vmem:[%s633_s2 + $0x38] sm:$0xff] }
   0x7   :  { %418 = vmatpush3.bf16.msra.mxu0 %v484_v1  ;;  %441 = vmatprep.subr.mxu1 %v240_v7  ;;  %v232_v18 = vld [vmem:[%s633_s2 + $0x30] sm:$0xff]  ;;  %v492_v19 = vld [vmem:[%s632_s0 + $0x8] sm:$0xff]   ;;  %v230_v22 = vld [vmem:[%s633_s2 + $0x20] sm:$0xff] }
   0x8   :  { %419 = vmatprep.subr.bf16.mxu0 %v485_v2  ;;  %442 = vmatpush3.msra.mxu1 %v240_v7  ;;  %v231_v20 = vld [vmem:[%s633_s2 + $0x28] sm:$0xff]  ;;  %v493_v21 = vld [vmem:[%s632_s0 + $0x10] sm:$0xff]   ;;  %v229_v23 = vld [vmem:[%s633_s2 + $0x18] sm:$0xff] }
   0x9   :  { %443 = vmatprep.subr.mxu1 %v239_v8  ;;  %v494_v24 = vld [vmem:[%s632_s0 + $0x18] sm:$0xff]   ;;  %v228_v25 = vld [vmem:[%s633_s2 + $0x10] sm:$0xff]  ;;  %v227_v26 = vld [vmem:[%s633_s2 + $0x8] sm:$0xff] }
   0xa   :  { %444 = vmatpush3.msra.mxu1 %v239_v8  ;;  %v226_v27 = vld [vmem:[%s633_s2] sm:$0xff] }
   0xb   :  { %420 = vmatpush3.bf16.msra.mxu0 %v485_v2  ;;  %445 = vmatprep.subr.mxu1 %v238_v10  ;;  %v378_v36 = vld [vmem:[%s634_s3] ss:$0 sm:$0xff] }
   0xc   :  { %421 = vmatprep.subr.bf16.mxu0 %v486_v3  ;;  %446 = vmatpush3.msra.mxu1 %v238_v10 }
   0xd   :  { %447 = vmatprep.subr.mxu1 %v237_v11 }
   0xe   :  { %448 = vmatpush3.msra.mxu1 %v237_v11 }
   0xf   :  { %422 = vmatpush3.bf16.msra.mxu0 %v486_v3  ;;  %449 = vmatprep.subr.mxu1 %v236_v13 }
  0x10   :  { %423 = vmatprep.subr.bf16.mxu0 %v487_v5  ;;  %450 = vmatpush3.msra.mxu1 %v236_v13 }
  0x11   :  { %451 = vmatprep.subr.mxu1 %v235_v14 }
  0x12   :  { %452 = vmatpush3.msra.mxu1 %v235_v14 }
  0x13   :  { %424 = vmatpush3.bf16.msra.mxu0 %v487_v5  ;;  %453 = vmatprep.subr.mxu1 %v234_v16 }
  0x14   :  { %425 = vmatprep.subr.bf16.mxu0 %v488_v9  ;;  %454 = vmatpush3.msra.mxu1 %v234_v16 }
  0x15   :  { %455 = vmatprep.subr.mxu1 %v233_v17 }
  0x16   :  { %456 = vmatpush3.msra.mxu1 %v233_v17 }
  0x17   :  { %426 = vmatpush3.bf16.msra.mxu0 %v488_v9  ;;  %457 = vmatprep.subr.mxu1 %v232_v18 }
  0x18   :  { %427 = vmatprep.subr.bf16.mxu0 %v489_v12  ;;  %458 = vmatpush3.msra.mxu1 %v232_v18 }
  0x19   :  { %459 = vmatprep.subr.mxu1 %v231_v20 }
  0x1a   :  { %460 = vmatpush3.msra.mxu1 %v231_v20 }
  0x1b   :  { %428 = vmatpush3.bf16.msra.mxu0 %v489_v12  ;;  %461 = vmatprep.subr.mxu1 %v230_v22 }
  0x1c   :  { %429 = vmatprep.subr.bf16.mxu0 %v490_v15  ;;  %462 = vmatpush3.msra.mxu1 %v230_v22 }
  0x1d   :  { %463 = vmatprep.subr.mxu1 %v229_v23 }
  0x1e   :  { %464 = vmatpush3.msra.mxu1 %v229_v23 }
  0x1f   :  { %430 = vmatpush3.bf16.msra.mxu0 %v490_v15  ;;  %465 = vmatprep.subr.mxu1 %v228_v25 }
  0x20   :  { %466 = vmatpush3.msra.mxu1 %v228_v25 }
  0x21   :  { %467 = vmatprep.subr.mxu1 %v227_v26 }
  0x22   :  { %432 = vmatmul.mubr.bf16.vlgmr.msra.gmra.mxu0 %v492_v19  ;;  %468 = vmatpush3.msra.mxu1 %v227_v26 }
  0x23   :  { %435 = vmatprep.mubr.bf16.mxu0 %v493_v21  ;;  %469 = vmatprep.subr.mxu1 %v226_v27 }
  0x24   :  { %470 = vmatpush3.msra.mxu1 %v226_v27 }
  0x2a   :  { %436 = vmatmul.mubr.bf16.gmra.mxu0 %v494_v24 }
  0xe2   :  { %v433_v28 = vpop.f32.mrf.mxu0 }
  0xe4   :  { %v168_v29 = vpop.f32.mrf.mxu0 }
  0xe5   :  { %471 = vmatprep.mubr.f32.mxu1 %v168_v29 }
  0xe6   :  { %v434_v30 = vpop.f32.mrf.mxu0 }
  0xe8   :  { %v171_v31 = vpop.f32.mrf.mxu0 }
  0xe9   :  { %472 = vmatmul.mubr.f32.vlgmr.msra.gmra.mxu1 %v171_v31 }
  0xea   :  { %v437_v32 = vpop.f32.mrf.mxu0  ;;  %474 = vmatprep.mubr.f32.mxu1 %v433_v28 }
  0xec   :  { %v184_v33 = vpop.f32.mrf.mxu0 }
  0xed   :  { %475 = vmatmul.mubr.f32.gmra.mxu1 %v434_v30 }
  0xee   :  { %v438_v34 = vpop.f32.mrf.mxu0  ;;  %477 = vmatprep.mubr.f32.mxu1 %v184_v33 }
  0xf0   :  { %v187_v35 = vpop.f32.mrf.mxu0 }
  0xf1   :  { %478 = vmatmul.mubr.f32.gmra.mxu1 %v187_v35 }
  0xf2   :  { %480 = vmatprep.mubr.f32.mxu1 %v437_v32 }
  0xf5   :  { %481 = vmatmul.mubr.f32.gmra.mxu1 %v438_v34 }
 0x1a9   :  { %v473_v37 = vpop.f32.mrf.mxu1 }
 0x1aa   :  { %v321_v38 = vadd.f32 %v473_v37, %v378_v36 }
 0x1ab   :  { %v315_v39 = vpop.f32.mrf.mxu1 }
 0x1ac   :  { %355 = vst [vmem:[%s635_s4 + $0x8] sm:$0xff] %v321_v38  ;;  %v316_v40 = vadd.f32 %v378_v36, %v315_v39 }
 0x1ad   :  { %v476_v41 = vpop.f32.mrf.mxu1 }
 0x1ae   :  { %354 = vst [vmem:[%s635_s4] sm:$0xff] %v316_v40  ;;  %v331_v42 = vadd.f32 %v476_v41, %v378_v36 }
 0x1af   :  { %v325_v43 = vpop.f32.mrf.mxu1 }
 0x1b0   :  { %357 = vst [vmem:[%s635_s4 + $0x18] sm:$0xff] %v331_v42  ;;  %v326_v44 = vadd.f32 %v378_v36, %v325_v43 }
 0x1b1   :  { %v479_v45 = vpop.f32.mrf.mxu1 }
 0x1b2   :  { %356 = vst [vmem:[%s635_s4 + $0x10] sm:$0xff] %v326_v44  ;;  %v341_v46 = vadd.f32 %v479_v45, %v378_v36 }
 0x1b3   :  { %v335_v47 = vpop.f32.mrf.mxu1 }
 0x1b4   :  { %359 = vst [vmem:[%s635_s4 + $0x28] sm:$0xff] %v341_v46  ;;  %v336_v48 = vadd.f32 %v378_v36, %v335_v47 }
 0x1b5   :  { %v482_v49 = vpop.f32.mrf.mxu1 }
 0x1b6   :  { %358 = vst [vmem:[%s635_s4 + $0x20] sm:$0xff] %v336_v48  ;;  %v351_v50 = vadd.f32 %v482_v49, %v378_v36 }
 0x1b7   :  { %v345_v51 = vpop.f32.mrf.mxu1 }
 0x1b8   :  { %361 = vst [vmem:[%s635_s4 + $0x38] sm:$0xff] %v351_v50  ;;  %v346_v52 = vadd.f32 %v378_v36, %v345_v51 }
 0x1ba   :  { %360 = vst [vmem:[%s635_s4 + $0x30] sm:$0xff] %v346_v52 }

</bundles_post_ra>
